<compile_context>
chip_gen: v7x
topology: tpu7x:2x2x1
jax: 0.10.0
libtpu: 0.0.40
codegen_flags: <defaults>
</compile_context>

<pallas_src>
import jax
import jax.numpy as jnp
from jax.experimental import pallas as pl
from jax.experimental.pallas import tpu as pltpu

LANES = 128
SUB = 8            # f32 sublane tile; accumulator block is (SUB, LANES)
TILE_R_MAX = 2048  # rows per grid step: 2048*128*4B = 1 MiB f32 per block
NCORES = 2         # split the stream across v7x's two TensorCores


def _make_kernel(mode, label, sign, n_valid, tile_r, bpc, needs_mask, with_l):
    """kernel(x_ref[, l_ref], out_ref): out_ref (SUB, LANES) accumulates per-lane
    partial sums of the per-element loss over the blocks owned by this core."""

    def kernel(*refs):
        if with_l:
            x_ref, l_ref, out_ref = refs
        else:
            x_ref, out_ref = refs

        c = pl.program_id(0)  # "parallel" core axis
        i = pl.program_id(1)  # "arbitrary" streaming axis

        @pl.when(i == 0)
        def _():
            out_ref[...] = jnp.zeros_like(out_ref)

        x = x_ref[...].astype(jnp.float32)

        if mode == "vanilla":
            # BCEWithLogits(x, y) per element: max(x,0) - x*y + log(1 + exp(-|x|))
            # (log(1+t) instead of log1p: t <= 1 so this is numerically fine and
            #  avoids relying on a log1p lowering in Mosaic.)
            v = jnp.maximum(x, 0.0) - x * label + jnp.log(1.0 + jnp.exp(-jnp.abs(x)))
        elif mode == "lsgan":
            v = (x - label) ** 2
        elif mode == "mean":
            # wgan / wgangp / hinge-generator: sign * x
            v = sign * x
        elif mode == "hinge_disc":
            l = l_ref[...].astype(jnp.float32) if with_l else 1.0
            # bool=True -> relu(l - x) (sign=-1); bool=False -> relu(l + x) (sign=+1)
            v = jnp.maximum(l + sign * x, 0.0)
        else:
            raise ValueError(mode)

        if needs_mask:
            # Zero the contribution of padded / over-covered elements.  Required
            # (not optional) because f(0) != 0 for vanilla / hinge.
            blk = c * bpc + i
            r_iota = jax.lax.broadcasted_iota(jnp.int32, (tile_r, LANES), 0)
            l_iota = jax.lax.broadcasted_iota(jnp.int32, (tile_r, LANES), 1)
            idx = (blk * tile_r + r_iota) * LANES + l_iota
            v = jnp.where(idx < n_valid, v, 0.0)

        # Pure-VPU accumulation: fold the (tile_r,128) block into an (8,128)
        # vreg-shaped partial; the single cross-lane reduce happens in the wrapper.
        out_ref[...] += jnp.sum(v.reshape(tile_r // SUB, SUB, LANES), axis=0)

    return kernel


def _to_lane_slab(x):
    """Flatten x to (rows, 128) in its native dtype.  rows is a multiple of the
    dtype's sublane tile; pads (one streaming copy) only if x.size is not
    already tile-aligned."""
    n = x.size
    sub = SUB * max(1, 4 // jnp.dtype(x.dtype).itemsize)  # 8 f32 / 16 bf16 / 32 i8
    rows = pl.cdiv(n, LANES)
    rows = pl.cdiv(rows, sub) * sub
    flat = x.reshape(-1)
    if rows * LANES != n:
        flat = jnp.pad(flat, (0, rows * LANES - n))
    return flat.reshape(rows, LANES), n


def _reduce_sum(x2, n, mode, label=0.0, sign=1.0, l2=None):
    """Pallas reduction: sum over the n valid elements of the per-element loss."""
    rows = x2.shape[0]
    tile_r = min(TILE_R_MAX, rows)
    nblocks = pl.cdiv(rows, tile_r)
    ncores = min(NCORES, nblocks)
    bpc = pl.cdiv(nblocks, ncores)            # blocks per core
    covered = ncores * bpc * tile_r * LANES   # elements the grid sweeps over
    needs_mask = covered != n
    clamp = ncores * bpc != nblocks           # some logical blocks fall off the end

    def x_index(c, i):
        blk = c * bpc + i
        if clamp:
            blk = jnp.minimum(blk, nblocks - 1)  # keep the DMA in bounds; masked in-kernel
        return (blk, 0)

    in_specs = [pl.BlockSpec((tile_r, LANES), x_index)]
    operands = [x2]
    if l2 is not None:
        in_specs.append(pl.BlockSpec((tile_r, LANES), x_index))
        operands.append(l2)

    kernel = _make_kernel(mode, float(label), float(sign), n, tile_r, bpc,
                          needs_mask, l2 is not None)

    partials = pl.pallas_call(
        kernel,
        out_shape=jax.ShapeDtypeStruct((ncores * SUB, LANES), jnp.float32),
        grid=(ncores, bpc),
        in_specs=in_specs,
        out_specs=pl.BlockSpec((SUB, LANES), lambda c, i: (c, 0)),
        compiler_params=pltpu.CompilerParams(
            dimension_semantics=("parallel", "arbitrary")),
    )(*operands)
    return jnp.sum(partials)


class AdversarialLoss:
    """JAX/Pallas port of the PyTorch AdversarialLoss module (forward only)."""

    def __init__(self, type, true_label=1.0, fake_label=0.0, smooth=False, seed=0):
        if type not in ("vanilla", "lsgan", "wgan", "wgangp", "hinge"):
            raise ValueError(f"{type} not implemented.")
        self.type = type
        self.true_label = float(true_label)
        self.fake_label = float(fake_label)
        self.smooth = bool(smooth)
        self.seed = int(seed)
        self._ncalls = 0

    def __call__(self, x, bool_, is_disc=False, key=None):
        x = jnp.asarray(x)
        x2, n = _to_lane_slab(x)

        if self.type in ("vanilla", "lsgan"):
            y = self.true_label if bool_ else self.fake_label
            mode = "vanilla" if self.type == "vanilla" else "lsgan"
            s = _reduce_sum(x2, n, mode, label=y)
            return 0.5 * s / n
        elif self.type in ("wgan", "wgangp"):
            s = _reduce_sum(x2, n, "mean", sign=-1.0 if bool_ else 1.0)
            return s / n
        else:  # hinge
            if is_disc:
                l2 = None
                if self.smooth:
                    # TODO(synk): torch draws l with th.rand_like (torch RNG stream);
                    # here the label is drawn with jax.random, so the stream differs.
                    if key is None:
                        key = jax.random.PRNGKey(self.seed + self._ncalls)
                        self._ncalls += 1
                    l2 = 0.2 * jax.random.uniform(key, x2.shape, jnp.float32) + 0.8
                s = _reduce_sum(x2, n, "hinge_disc",
                                sign=-1.0 if bool_ else 1.0, l2=l2)
                return s / n
            return _reduce_sum(x2, n, "mean", sign=-1.0) / n


# ---------------------------------------------------------------------------
# Pure-JAX references for validation
# ---------------------------------------------------------------------------
def _ref_loss(x, type_, bool_, is_disc, true_label=1.0, fake_label=0.0):
    x = x.astype(jnp.float32)
    if type_ == "vanilla":
        y = true_label if bool_ else fake_label
        bce = jnp.maximum(x, 0.0) - x * y + jnp.log1p(jnp.exp(-jnp.abs(x)))
        return 0.5 * jnp.mean(bce)
    if type_ == "lsgan":
        y = true_label if bool_ else fake_label
        return 0.5 * jnp.mean((x - y) ** 2)
    if type_ in ("wgan", "wgangp"):
        return -jnp.mean(x) if bool_ else jnp.mean(x)
    if type_ == "hinge":
        if is_disc:
            return (jnp.mean(jnp.maximum(1.0 - x, 0.0)) if bool_
                    else jnp.mean(jnp.maximum(1.0 + x, 0.0)))
        return -jnp.mean(x)
    raise ValueError(type_)


if __name__ == "__main__":
    key = jax.random.PRNGKey(0)
    k1, k2 = jax.random.split(key)
    # Discriminator-logit-like NCHW input (lane-aligned size: 2*4*16*16 = 2048).
    x = jax.random.normal(k1, (2, 4, 16, 16), dtype=jnp.float32)
    # Odd-sized input that exercises the in-kernel tail mask (3*1*7*5 = 105).
    x_odd = jax.random.normal(k2, (3, 1, 7, 5), dtype=jnp.float32)

    cases = [
        ("vanilla", True, False),
        ("vanilla", False, False),
        ("lsgan", True, False),
        ("lsgan", False, False),
        ("wgan", True, False),
        ("wgangp", False, False),
        ("hinge", True, True),
        ("hinge", False, True),
        ("hinge", True, False),  # generator path
    ]

    for xin in (x, x_odd):
        for type_, b, is_disc in cases:
            mod = AdversarialLoss(type_)
            out = jax.block_until_ready(mod(xin, b, is_disc=is_disc))
            ref = _ref_loss(xin, type_, b, is_disc)
            assert jnp.allclose(out, ref, rtol=1e-5, atol=1e-5), (
                type_, b, is_disc, tuple(xin.shape), float(out), float(ref))

    # Native bf16 streaming (no wrapper upcast): compare against the f32
    # reference evaluated on the same bf16 values.
    x_bf = x.astype(jnp.bfloat16)
    out_bf = jax.block_until_ready(AdversarialLoss("lsgan")(x_bf, True))
    ref_bf = _ref_loss(x_bf.astype(jnp.float32), "lsgan", True, False)
    assert jnp.allclose(out_bf, ref_bf, rtol=1e-4, atol=1e-5), (float(out_bf), float(ref_bf))

    # Smooth hinge (stochastic label l = 0.2*rand + 0.8, drawn with jax.random;
    # RNG stream differs from torch): check the result lies in the valid envelope.
    mod_s = AdversarialLoss("hinge", smooth=True, seed=123)
    out_s = jax.block_until_ready(mod_s(x, True, is_disc=True))
    lo = jnp.mean(jnp.maximum(0.8 - x, 0.0))
    hi = jnp.mean(jnp.maximum(1.0 - x, 0.0))
    assert (out_s >= lo - 1e-4) and (out_s <= hi + 1e-4), (
        float(out_s), float(lo), float(hi))

    print("KERNEL_OK")
</pallas_src>

<mosaic_0001>
module attributes {stable_mosaic.version = 11 : i64} {
  func.func @kernel(%arg0: i32, %arg1: i32, %arg2: memref<16x128xf32, #tpu.memory_space<vmem>>, %arg3: memref<8x128xf32, #tpu.memory_space<vmem>>) attributes {dimension_semantics = [#tpu.dimension_semantics<parallel>, #tpu.dimension_semantics<arbitrary>], iteration_bounds = array<i64: 1, 1>, scalar_prefetch = 0 : i64, scratch_operands = 0 : i64, tpu.core_type = #tpu.core_type<tc>, window_params = [{transform_indices = @transform_0, window_bounds = array<i64: 16, 128>}, {transform_indices = @transform_1, window_bounds = array<i64: 8, 128>}]} {
    %c0_i32 = arith.constant 0 : i32
    %0 = arith.cmpi eq, %arg1, %c0_i32 : i32
    %1 = arith.extui %0 : i1 to i32
    %c0_i32_0 = arith.constant 0 : i32
    %2 = arith.cmpi ne, %1, %c0_i32_0 : i32
    scf.if %2 {
      %cst_10 = arith.constant 0.000000e+00 : f32
      %22 = vector.broadcast %cst_10 : f32 to vector<8x128xf32>
      %c0_11 = arith.constant 0 : index
      %c0_12 = arith.constant 0 : index
      %23 = vector.load %arg3[%c0_11, %c0_12] : memref<8x128xf32, #tpu.memory_space<vmem>>, vector<8x128xf32>
      tpu.vector_store %arg3[%c0_11, %c0_12], %22 {strides = array<i32>} : memref<8x128xf32, #tpu.memory_space<vmem>>, vector<8x128xf32>,
    } else {
    }
    %c0 = arith.constant 0 : index
    %c0_1 = arith.constant 0 : index
    %3 = vector.load %arg2[%c0, %c0_1] : memref<16x128xf32, #tpu.memory_space<vmem>>, vector<16x128xf32>
    %cst = arith.constant 0.000000e+00 : f32
    %4 = vector.broadcast %cst : f32 to vector<16x128xf32>
    %5 = arith.maximumf %3, %4 : vector<16x128xf32>
    %cst_2 = arith.constant 1.000000e+00 : f32
    %6 = vector.broadcast %cst_2 : f32 to vector<16x128xf32>
    %7 = arith.mulf %3, %6 : vector<16x128xf32>
    %8 = arith.subf %5, %7 : vector<16x128xf32>
    %9 = math.absf %3 : vector<16x128xf32>
    %cst_3 = arith.constant 0.000000e+00 : f32
    %10 = vector.broadcast %cst_3 : f32 to vector<16x128xf32>
    %11 = arith.subf %10, %9 : vector<16x128xf32>
    %12 = math.exp %11 : vector<16x128xf32>
    %cst_4 = arith.constant 1.000000e+00 : f32
    %13 = vector.broadcast %cst_4 : f32 to vector<16x128xf32>
    %14 = arith.addf %13, %12 : vector<16x128xf32>
    %15 = math.log %14 : vector<16x128xf32>
    %16 = arith.addf %8, %15 : vector<16x128xf32>
    %c0_5 = arith.constant 0 : index
    %c0_6 = arith.constant 0 : index
    %17 = vector.load %arg3[%c0_5, %c0_6] : memref<8x128xf32, #tpu.memory_space<vmem>>, vector<8x128xf32>
    %18 = vector.shape_cast %16 : vector<16x128xf32> to vector<2x8x128xf32>
    %cst_7 = arith.constant dense<0.000000e+00> : vector<8x128xf32>
    %19 = vector.multi_reduction <add>, %18, %cst_7 [0] : vector<2x8x128xf32> to vector<8x128xf32>
    %20 = arith.addf %17, %19 : vector<8x128xf32>
    %c0_8 = arith.constant 0 : index
    %c0_9 = arith.constant 0 : index
    %21 = vector.load %arg3[%c0_8, %c0_9] : memref<8x128xf32, #tpu.memory_space<vmem>>, vector<8x128xf32>
    tpu.vector_store %arg3[%c0_8, %c0_9], %20 {strides = array<i32>} : memref<8x128xf32, #tpu.memory_space<vmem>>, vector<8x128xf32>,
    return
  }
  func.func @transform_0(%arg0: i32, %arg1: i32) -> (i32, i32) {
    %c1_i32 = arith.constant 1 : i32
    %0 = arith.muli %arg0, %c1_i32 : i32
    %1 = arith.addi %0, %arg1 : i32
    %c0_i32 = arith.constant 0 : i32
    %c0_i32_0 = arith.constant 0 : i32
    return %1, %c0_i32 : i32, i32
  }
  func.func @transform_1(%arg0: i32, %arg1: i32) -> (i32, i32) {
    %c0_i32 = arith.constant 0 : i32
    %c0_i32_0 = arith.constant 0 : i32
    return %arg0, %c0_i32 : i32, i32
  }
}

</mosaic_0001>

<bundles_post_ra>
// kernel: tpu_custom_call.1
= control target key start
LH: loop header
LB: loop body
LE: loop exit
PB: predicated region body
PF: predicated region fallthrough
CT: control target
= control target key end

     0   :  { %6 = vsyncpa [#allocation3], 0  ;;  %s174_s0 = inlined_call_operand.hbm [shape: f32[16,128], index: 0, kind: input, shape index: {}]   ;;  %s175_s1 = inlined_call_operand.hbm [shape: f32[8,128], index: 1, kind: output, shape index: {}]  }
   0x1   :  { %7 = vsyncpa [#allocation4], 0  ;;  %s136_s6 = smov [#allocation2]   ;;  %s88_s10 = scalar_lea.hbm %s174_s0, 256 }
   0x2   :  { %s17_s7 = sshll.u32 %s136_s6, 4  ;;  %p89_p0 = scmp.ne.s32.totalorder %s174_s0, %s88_s10  ;;  %s18_s7 = int_to_ptr.vmem [resolvable:$true] %s17_s7 }
   0x3   :  { %p92_p1 = scmp.lt.u32.totalorder %s88_s10, %s174_s0 }
   0x5   :  { %p94_p2 = pnand %p92_p1, %p89_p0 }
   0x7   :  { %97 = shalt.err (!%p94_p2)
}
   0x8   :  { %s98_s15 = scalar_lea.vmem %s18_s7, 256  ;;  %p103_p4 = scmp.lt.s32.totalorder %s18_s7, %s18_s7 }
   0x9   :  { %p99_p3 = scmp.ne.s32.totalorder %s18_s7, %s98_s15  ;;  %p104_p5 = scmp.lt.s32.totalorder %s98_s15, %s98_s15 }
   0xb   :  { %p105_p6 = por %p104_p5, %p103_p4 }
   0xd   :  { %p106_p7 = pnand %p105_p6, %p99_p3 }
   0xf   :  { %109 = shalt.err (!%p106_p7)
}
  0x10   :  { %s137_s16 = smov 128   ;;  %s138_s17 = smov 8  }
  0x11   :  { %23 = dma.hbm_to_vmem [thread:$0]  %s174_s0, 256, %s18_s7, [#allocation3], %s137_s16, %s137_s16, %s138_s17  }
  0x12   :  { %132 = dma.done.wait [#allocation3], 256  }
  0x13   :  { %133 = vsyncadd [#allocation3], 4294967040  ;;  %v34_v0 = vld [vmem:[#allocation2] sm:$0xff]  ;;  %v35_v1 = vld [vmem:[#allocation2 + $0x8] sm:$0xff]  ;;  %s139_s0 = smov [#allocation5]  }
  0x14   :  { %v40_v2 = vand.u32 2147483647, %v34_v0  ;;  %v41_v3 = vand.u32 2147483647, %v35_v1  ;;  %v36_v12 = vmax.f32 %v34_v0, 0.0  ;;  %v37_v13 = vmax.f32 %v35_v1, 0.0 }
  0x15   :  { %s66_s20 = sshll.u32 %s139_s0, 4  ;;  %s67_s20 = int_to_ptr.vmem [resolvable:$true] %s66_s20 }
  0x16   :  { %v42_v4 = vsub.f32 0.0, %v40_v2  ;;  %v43_v5 = vsub.f32 0.0, %v41_v3  ;;  %v38_v14 = vsub.f32 %v36_v12, %v34_v0  ;;  %v39_v16 = vsub.f32 %v37_v13, %v35_v1  ;;  %s110_s21 = scalar_lea.vmem %s67_s20, 128  ;;  %p115_p9 = scmp.lt.s32.totalorder %s67_s20, %s67_s20 }
  0x17   :  { %p111_p8 = scmp.ne.s32.totalorder %s67_s20, %s110_s21  ;;  %p116_p10 = scmp.lt.s32.totalorder %s110_s21, %s110_s21 }
  0x18   :  { %v44_v6 = vmul.f32 1.442695, %v42_v4  ;;  %v46_v7 = vmul.f32 1.442695, %v43_v5 }
  0x19   :  { %p117_p11 = por %p116_p10, %p115_p9 }
  0x1a   :  { %80 = vpow2.f32 %v44_v6 }
  0x1b   :  { %82 = vpow2.f32 %v46_v7  ;;  %p118_p12 = pnand %p117_p11, %p111_p8 }
  0x24   :  { %v81_v8 = vpop.eup %80 }
  0x25   :  { %v83_v9 = vpop.eup %82  ;;  %v48_v10 = vadd.f32 1.0, %v81_v8 }
  0x26   :  { %v49_v11 = vadd.f32 1.0, %v83_v9 }
  0x27   :  { %84 = vlog2.f32 %v48_v10 }
  0x28   :  { %86 = vlog2.f32 %v49_v11 }
  0x31   :  { %v85_v15 = vpop.eup %84 }
  0x32   :  { %v87_v17 = vpop.eup %86  ;;  %v51_v18 = vmul.f32 0.6931472, %v85_v15 }
  0x33   :  { %v53_v19 = vmul.f32 0.6931472, %v87_v17 }
  0x34   :  { %v54_v20 = vadd.f32 %v51_v18, %v38_v14 }
  0x35   :  { %v55_v21 = vadd.f32 %v53_v19, %v39_v16 }
  0x37   :  { %v57_v22 = vadd.f32 %v55_v21, %v54_v20 }
  0x39   :  { %59 = vst [vmem:[#allocation5] sm:$0xff] %v57_v22 }
  0x3a   :  { %121 = shalt.err (!%p118_p12)
}
  0x3b   :  { %s122_s24 = scalar_lea.hbm %s175_s1, 128 }
  0x3c   :  { %p123_p13 = scmp.ne.s32.totalorder %s175_s1, %s122_s24  ;;  %p126_p0 = scmp.lt.u32.totalorder %s122_s24, %s175_s1 }
  0x3e   :  { %p128_p1 = pnand %p126_p0, %p123_p13 }
  0x40   :  { %131 = shalt.err (!%p128_p1)
}
  0x41   :  { %69 = dma.vmem_to_hbm [thread:$0]  %s67_s20, 128, %s175_s1, [#allocation4]  }
  0x42   :  { %134 = dma.done.wait [#allocation4], 128  }
  0x43   :  { %135 = vsyncadd [#allocation4], 4294967168 }
  0x44   :  { %73 = vsyncpa [#allocation3], 1 }
  0x45   :  { %74 = vsyncpa [#allocation4], 1 }

</bundles_post_ra>
